<compile_context>
chip_gen: v7x
topology: tpu7x:2x2x1
jax: 0.10.0
libtpu: 0.0.40
codegen_flags: <defaults>
</compile_context>

<pallas_src>
import jax
import jax.numpy as jnp
from jax.experimental import pallas as pl
from jax.experimental.pallas import tpu as pltpu


def _dequantizer_kernel(idx_ref, embed_ref, out_ref):
    # idx_ref:   (n, TM, 1) int32  — codes for this row tile, pre-offset by i*K
    # embed_ref: (n*K, D)  float32 — all n active codebooks stacked row-wise
    # out_ref:   (TM, D)   float32 — output tile for this grid step
    n = idx_ref.shape[0]
    tm = out_ref.shape[0]
    nk = embed_ref.shape[0]

    # Multi-hot selection matrix: layer i's columns live in [i*K, (i+1)*K),
    # which are disjoint, so summing per-layer one-hots is exact.
    iota = jax.lax.broadcasted_iota(jnp.int32, (tm, nk), 1)
    one_hot = (iota == idx_ref[0]).astype(jnp.float32)
    for i in range(1, n):  # n is small and static -> unrolled VPU compares
        one_hot += (iota == idx_ref[i]).astype(jnp.float32)

    # Single MXU contraction over all n layers at once.
    out_ref[...] = jnp.dot(
        one_hot, embed_ref[...], preferred_element_type=jnp.float32
    )


def dequantize(indices, embeds, n, row_tile=256):
    """indices: (Q, B, T) int; embeds: (Q, K, D) float32; n: python int (<= Q)."""
    Q, B, T = indices.shape
    _, K, D = embeds.shape
    assert 0 < n <= Q
    BT = B * T

    # Offset layer-i codes into the stacked codebook's row space, flatten rows.
    offs = (jnp.arange(n, dtype=jnp.int32) * K)[:, None]          # (n, 1)
    idx_off = indices[:n].reshape(n, BT).astype(jnp.int32) + offs  # (n, BT)

    # Pad rows to a sublane-aligned tile size (multiple of 8).
    tm = min(row_tile, pl.cdiv(BT, 8) * 8)
    bt_pad = pl.cdiv(BT, tm) * tm
    if bt_pad != BT:
        idx_off = jnp.pad(idx_off, ((0, 0), (0, bt_pad - BT)))
    # Present codes one-per-sublane: (n, BT_pad, 1).
    idx_off = idx_off[:, :, None]

    # Stack the n active codebooks along the contraction axis: (n*K, D).
    embed_stacked = embeds[:n].reshape(n * K, D)

    out = pl.pallas_call(
        _dequantizer_kernel,
        out_shape=jax.ShapeDtypeStruct((bt_pad, D), jnp.float32),
        grid_spec=pltpu.PrefetchScalarGridSpec(
            num_scalar_prefetch=0,
            grid=(bt_pad // tm,),
            in_specs=[
                # Row tile of codes for every active layer.
                pl.BlockSpec((n, tm, 1), lambda r: (0, r, 0)),
                # Full stacked codebook; constant block index -> fetched once.
                pl.BlockSpec((n * K, D), lambda r: (0, 0)),
            ],
            out_specs=pl.BlockSpec((tm, D), lambda r: (r, 0)),
        ),
        compiler_params=pltpu.CompilerParams(
            dimension_semantics=("parallel",),
        ),
    )(idx_off, embed_stacked)

    return out[:BT].reshape(B, T, D)


def dequantize_ref(indices, embeds, n):
    # pure-JAX reference of the PyTorch forward
    out = jnp.zeros((1,), dtype=jnp.float32)
    for i in range(n):
        out = out + embeds[i][indices[i]]
    return out


if __name__ == "__main__":
    # Small, forward-consistent shapes.
    num_quantizers = 4      # Q
    codebook_size = 64      # K
    dim = 128               # D
    B, T = 2, 8             # per-layer index shape
    n = 3                   # number of active quantizer layers

    key = jax.random.PRNGKey(0)
    k_embed, k_idx = jax.random.split(key)

    # Deterministic synthetic parameters (embed ~ randn, as in __init__).
    embeds = jax.random.normal(
        k_embed, (num_quantizers, codebook_size, dim), dtype=jnp.float32
    )
    indices = jax.random.randint(
        k_idx, (num_quantizers, B, T), 0, codebook_size, dtype=jnp.int32
    )

    out = dequantize(indices, embeds, n)
    out = jax.block_until_ready(out)

    ref = dequantize_ref(indices, embeds, n)
    assert out.shape == (B, T, dim)
    assert jnp.allclose(out, ref, atol=1e-5, rtol=1e-5)

    print("KERNEL_OK")
</pallas_src>

<mosaic_0001>
module attributes {stable_mosaic.version = 11 : i64} {
  func.func @_dequantizer_kernel(%arg0: i32, %arg1: memref<3x16x1xi32, #tpu.memory_space<vmem>>, %arg2: memref<192x128xf32, #tpu.memory_space<vmem>>, %arg3: memref<16x128xf32, #tpu.memory_space<vmem>>) attributes {dimension_semantics = [#tpu.dimension_semantics<parallel>], iteration_bounds = array<i64: 1>, scalar_prefetch = 0 : i64, scratch_operands = 0 : i64, tpu.core_type = #tpu.core_type<tc>, window_params = [{transform_indices = @transform_0, window_bounds = array<i64: 3, 16, 1>}, {pipeline_mode = #tpu.pipeline_mode<synchronous>, transform_indices = @transform_1, window_bounds = array<i64: 192, 128>}, {transform_indices = @transform_2, window_bounds = array<i64: 16, 128>}]} {
    %0 = tpu.iota {dimensions = array<i32: 1>} : vector<16x192xi32>
    %c0 = arith.constant 0 : index
    %c0_0 = arith.constant 0 : index
    %c0_1 = arith.constant 0 : index
    %1 = vector.load %arg1[%c0, %c0_0, %c0_1] : memref<3x16x1xi32, #tpu.memory_space<vmem>>, vector<1x16x1xi32>
    %2 = vector.shape_cast %1 : vector<1x16x1xi32> to vector<16x1xi32>
    %3 = vector.broadcast %2 : vector<16x1xi32> to vector<16x192xi32>
    %4 = arith.cmpi eq, %0, %3 : vector<16x192xi32>
    %5 = arith.extui %4 : vector<16x192xi1> to vector<16x192xi32>
    %6 = arith.sitofp %5 : vector<16x192xi32> to vector<16x192xf32>
    %c1 = arith.constant 1 : index
    %c0_2 = arith.constant 0 : index
    %c0_3 = arith.constant 0 : index
    %7 = vector.load %arg1[%c1, %c0_2, %c0_3] : memref<3x16x1xi32, #tpu.memory_space<vmem>>, vector<1x16x1xi32>
    %8 = vector.shape_cast %7 : vector<1x16x1xi32> to vector<16x1xi32>
    %9 = vector.broadcast %8 : vector<16x1xi32> to vector<16x192xi32>
    %10 = arith.cmpi eq, %0, %9 : vector<16x192xi32>
    %11 = arith.extui %10 : vector<16x192xi1> to vector<16x192xi32>
    %12 = arith.sitofp %11 : vector<16x192xi32> to vector<16x192xf32>
    %13 = arith.addf %6, %12 : vector<16x192xf32>
    %c2 = arith.constant 2 : index
    %c0_4 = arith.constant 0 : index
    %c0_5 = arith.constant 0 : index
    %14 = vector.load %arg1[%c2, %c0_4, %c0_5] : memref<3x16x1xi32, #tpu.memory_space<vmem>>, vector<1x16x1xi32>
    %15 = vector.shape_cast %14 : vector<1x16x1xi32> to vector<16x1xi32>
    %16 = vector.broadcast %15 : vector<16x1xi32> to vector<16x192xi32>
    %17 = arith.cmpi eq, %0, %16 : vector<16x192xi32>
    %18 = arith.extui %17 : vector<16x192xi1> to vector<16x192xi32>
    %19 = arith.sitofp %18 : vector<16x192xi32> to vector<16x192xf32>
    %20 = arith.addf %13, %19 : vector<16x192xf32>
    %c0_6 = arith.constant 0 : index
    %c0_7 = arith.constant 0 : index
    %21 = vector.load %arg2[%c0_6, %c0_7] : memref<192x128xf32, #tpu.memory_space<vmem>>, vector<192x128xf32>
    %cst = arith.constant dense<0.000000e+00> : vector<16x128xf32>
    %22 = tpu.matmul %20, %21, %cst {dimension_numbers = #tpu.dot_dimension_numbers<[1], [0], [0], [1], [0, 0, 1, 1], [], []>} : vector<16x192xf32>, vector<192x128xf32>, vector<16x128xf32> -> vector<16x128xf32>
    %c0_8 = arith.constant 0 : index
    %c0_9 = arith.constant 0 : index
    %23 = vector.load %arg3[%c0_8, %c0_9] : memref<16x128xf32, #tpu.memory_space<vmem>>, vector<16x128xf32>
    tpu.vector_store %arg3[%c0_8, %c0_9], %22 {strides = array<i32>} : memref<16x128xf32, #tpu.memory_space<vmem>>, vector<16x128xf32>,
    return
  }
  func.func @transform_0(%arg0: i32) -> (i32, i32, i32) {
    %c0_i32 = arith.constant 0 : i32
    %c0_i32_0 = arith.constant 0 : i32
    %c0_i32_1 = arith.constant 0 : i32
    return %c0_i32, %arg0, %c0_i32_0 : i32, i32, i32
  }
  func.func @transform_1(%arg0: i32) -> (i32, i32) {
    %c0_i32 = arith.constant 0 : i32
    %c0_i32_0 = arith.constant 0 : i32
    %c0_i32_1 = arith.constant 0 : i32
    return %c0_i32, %c0_i32_0 : i32, i32
  }
  func.func @transform_2(%arg0: i32) -> (i32, i32) {
    %c0_i32 = arith.constant 0 : i32
    %c0_i32_0 = arith.constant 0 : i32
    return %arg0, %c0_i32 : i32, i32
  }
}

</mosaic_0001>

<bundles_post_ra>
// kernel: tpu_custom_call.1
= control target key start
LH: loop header
LB: loop body
LE: loop exit
PB: predicated region body
PF: predicated region fallthrough
CT: control target
= control target key end

     0   :  { %7 = vsyncpa [#allocation3], 0  ;;  %s455_s0 = inlined_call_operand.vmem [shape: s32[3,16,1], index: 0, kind: input, shape index: {}]   ;;  %s456_s1 = inlined_call_operand.hbm [shape: f32[192,128], index: 1, kind: input, shape index: {}]   ;;  %s457_s2 = inlined_call_operand.hbm [shape: f32[16,128], index: 2, kind: output, shape index: {}]  }
   0x1   :  { %8 = vsyncpa [#allocation4], 0  ;;  %s359_s9 = smov [#allocation2]   ;;  %s311_s13 = scalar_lea.hbm %s456_s1, 3072 }
   0x2   :  { %s16_s10 = sshll.u32 %s359_s9, 4  ;;  %p312_p0 = scmp.ne.s32.totalorder %s456_s1, %s311_s13  ;;  %s17_s10 = int_to_ptr.vmem [resolvable:$true] %s16_s10 }
   0x3   :  { %p315_p1 = scmp.lt.u32.totalorder %s311_s13, %s456_s1 }
   0x5   :  { %p317_p2 = pnand %p315_p1, %p312_p0 }
   0x7   :  { %320 = shalt.err (!%p317_p2)
}
   0x8   :  { %s321_s18 = scalar_lea.vmem %s17_s10, 3072  ;;  %p326_p4 = scmp.lt.s32.totalorder %s17_s10, %s17_s10 }
   0x9   :  { %p322_p3 = scmp.ne.s32.totalorder %s17_s10, %s321_s18  ;;  %p327_p5 = scmp.lt.s32.totalorder %s321_s18, %s321_s18 }
   0xb   :  { %p328_p6 = por %p327_p5, %p326_p4 }
   0xd   :  { %p329_p7 = pnand %p328_p6, %p322_p3 }
   0xf   :  { %332 = shalt.err (!%p329_p7)
}
  0x10   :  { %s360_s19 = smov 128   ;;  %s361_s20 = smov 8  }
  0x11   :  { %22 = dma.hbm_to_vmem [thread:$0]  %s456_s1, 3072, %s17_s10, [#allocation3], %s360_s19, %s360_s19, %s361_s20  }
  0x12   :  { %355 = dma.done.wait [#allocation3], 3072  }
  0x13   :  { %356 = vsyncadd [#allocation3], 4294964224  ;;  %v362_v0 = vmov 0   ;;  %v363_v1 = vmov 0.0|0.0   ;;  %v228_v2 = vld [vmem:[%s455_s0 + $0x10] sm:$0xff]  ;;  %v29_v3 = vld [vmem:[%s455_s0] sm:$0xff]  ;;  %v26_v44 = vlaneseq }
  0x14   :  { %310 = vset.pattern.permute.xlu1 %v362_v0  ;;  %309 = vset.pattern.permute.xlu0 %v362_v0  ;;  %v229_v4 = vld [vmem:[%s455_s0 + $0x18] sm:$0xff]  ;;  %v30_v5 = vld [vmem:[%s455_s0 + $0x8] sm:$0xff]  ;;  %v99_v6 = vld [vmem:[#allocation2] sm:$0xff]  ;;  %v364_v49 = vmov 0.0   ;;  %vm123_vm8 = vcmask 523264  }
  0x15   :  { %242 = vmatprep.subr.bf16.mxu0 %v363_v1  ;;  %278 = vmatprep.subr.bf16.mxu1 %v363_v1  ;;  %v100_v7 = vld [vmem:[#allocation2 + $0x8] sm:$0xff]  ;;  %v101_v9 = vld [vmem:[#allocation2 + $0x10] sm:$0xff]  ;;  %v102_v10 = vld [vmem:[#allocation2 + $0x18] sm:$0xff]  ;;  %v27_v45 = vand.u32 127, %v26_v44 }
  0x16   :  { %53 = vperm.xlu1 %310, %v228_v2   ;;  %32 = vperm.xlu0 %309, %v29_v3   ;;  %v243_v8 = vpack.c.bf16 %v100_v7, %v99_v6  ;;  %v235_v11 = vld [vmem:[%s455_s0 + $0x28] sm:$0xff]  ;;  %v234_v12 = vld [vmem:[%s455_s0 + $0x20] sm:$0xff]  ;;  %v246_v13 = vpack.c.bf16 %v102_v10, %v101_v9  ;;  %v105_v17 = vld [vmem:[#allocation2 + $0x30] sm:$0xff]  ;;  %s365_s0 = smov [#allocation5]  }
  0x17   :  { %v103_v14 = vld [vmem:[#allocation2 + $0x20] sm:$0xff]  ;;  %v104_v15 = vld [vmem:[#allocation2 + $0x28] sm:$0xff]  ;;  %v106_v18 = vld [vmem:[#allocation2 + $0x38] sm:$0xff]  ;;  %v28_v46 = vadd.s32 128, %v27_v45  ;;  %s212_s6 = sshll.u32 %s365_s0, 4  ;;  %s213_s6 = int_to_ptr.vmem [resolvable:$true] %s212_s6 }
  0x18   :  { %244 = vmatpush1.bf16.msra.mxu0 %v243_v8  ;;  %290 = vmatpush1.bf16.msra.mxu1 %v243_v8  ;;  %v249_v16 = vpack.c.bf16 %v104_v15, %v103_v14  ;;  %v252_v19 = vpack.c.bf16 %v106_v18, %v105_v17  ;;  %v107_v20 = vld [vmem:[#allocation2 + $0x40] sm:$0xff]  ;;  %v108_v21 = vld [vmem:[#allocation2 + $0x48] sm:$0xff]  ;;  %v109_v23 = vld [vmem:[#allocation2 + $0x50] sm:$0xff]  ;;  %s333_s7 = scalar_lea.vmem %s213_s6, 256  ;;  %p338_p9 = scmp.lt.s32.totalorder %s213_s6, %s213_s6 }
  0x19   :  { %245 = vmatprep.subr.bf16.mxu0 %v363_v1  ;;  %279 = vmatprep.subr.bf16.mxu1 %v363_v1  ;;  %v255_v22 = vpack.c.bf16 %v108_v21, %v107_v20  ;;  %v110_v24 = vld [vmem:[#allocation2 + $0x58] sm:$0xff]  ;;  %v111_v26 = vld [vmem:[#allocation2 + $0x60] sm:$0xff]  ;;  %v112_v27 = vld [vmem:[#allocation2 + $0x68] sm:$0xff]  ;;  %p334_p8 = scmp.ne.s32.totalorder %s213_s6, %s333_s7  ;;  %p339_p10 = scmp.lt.s32.totalorder %s333_s7, %s333_s7 }
  0x1a   :  { %56 = vperm.xlu1 %310, %v229_v4   ;;  %35 = vperm.xlu0 %309, %v30_v5   ;;  %v258_v25 = vpack.c.bf16 %v110_v24, %v109_v23  ;;  %v261_v28 = vpack.c.bf16 %v112_v27, %v111_v26  ;;  %v113_v29 = vld [vmem:[#allocation2 + $0x70] sm:$0xff]  ;;  %v114_v30 = vld [vmem:[#allocation2 + $0x78] sm:$0xff]  ;;  %v115_v32 = vld [vmem:[#allocation2 + $0x80] sm:$0xff] }
  0x1b   :  { %v264_v31 = vpack.c.bf16 %v114_v30, %v113_v29  ;;  %v116_v33 = vld [vmem:[#allocation2 + $0x88] sm:$0xff]  ;;  %v117_v35 = vld [vmem:[#allocation2 + $0x90] sm:$0xff]  ;;  %v118_v36 = vld [vmem:[#allocation2 + $0x98] sm:$0xff]  ;;  %p340_p11 = por %p339_p10, %p338_p9 }
  0x1c   :  { %247 = vmatpush1.bf16.msra.mxu0 %v246_v13  ;;  %291 = vmatpush1.bf16.msra.mxu1 %v246_v13  ;;  %v267_v34 = vpack.c.bf16 %v116_v33, %v115_v32  ;;  %v270_v37 = vpack.c.bf16 %v118_v36, %v117_v35  ;;  %v119_v38 = vld [vmem:[#allocation2 + $0xa0] sm:$0xff]  ;;  %v120_v39 = vld [vmem:[#allocation2 + $0xa8] sm:$0xff]  ;;  %v121_v41 = vld [vmem:[#allocation2 + $0xb0] sm:$0xff] }
  0x1d   :  { %248 = vmatprep.subr.bf16.mxu0 %v363_v1  ;;  %280 = vmatprep.subr.bf16.mxu1 %v363_v1  ;;  %v273_v40 = vpack.c.bf16 %v120_v39, %v119_v38  ;;  %v122_v42 = vld [vmem:[#allocation2 + $0xb8] sm:$0xff]  ;;  %p341_p12 = pnand %p340_p11, %p334_p8 }
  0x1e   :  { %81 = vperm.xlu1 %310, %v235_v11   ;;  %78 = vperm.xlu0 %309, %v234_v12   ;;  %v276_v43 = vpack.c.bf16 %v122_v42, %v121_v41 }
  0x20   :  { %250 = vmatpush1.bf16.msra.mxu0 %v249_v16  ;;  %292 = vmatpush1.bf16.msra.mxu1 %v249_v16 }
  0x21   :  { %251 = vmatprep.subr.bf16.mxu0 %v363_v1  ;;  %281 = vmatprep.subr.bf16.mxu1 %v363_v1 }
  0x24   :  { %253 = vmatpush1.bf16.msra.mxu0 %v252_v19  ;;  %293 = vmatpush1.bf16.msra.mxu1 %v252_v19 }
  0x25   :  { %254 = vmatprep.subr.bf16.mxu0 %v363_v1  ;;  %282 = vmatprep.subr.bf16.mxu1 %v363_v1 }
  0x28   :  { %256 = vmatpush1.bf16.msra.mxu0 %v255_v22  ;;  %294 = vmatpush1.bf16.msra.mxu1 %v255_v22 }
  0x29   :  { %257 = vmatprep.subr.bf16.mxu0 %v363_v1  ;;  %283 = vmatprep.subr.bf16.mxu1 %v363_v1 }
  0x2c   :  { %259 = vmatpush1.bf16.msra.mxu0 %v258_v25  ;;  %295 = vmatpush1.bf16.msra.mxu1 %v258_v25 }
  0x2d   :  { %260 = vmatprep.subr.bf16.mxu0 %v363_v1  ;;  %284 = vmatprep.subr.bf16.mxu1 %v363_v1 }
  0x30   :  { %262 = vmatpush1.bf16.msra.mxu0 %v261_v28  ;;  %296 = vmatpush1.bf16.msra.mxu1 %v261_v28 }
  0x31   :  { %263 = vmatprep.subr.bf16.mxu0 %v363_v1  ;;  %285 = vmatprep.subr.bf16.mxu1 %v363_v1 }
  0x34   :  { %265 = vmatpush1.bf16.msra.mxu0 %v264_v31  ;;  %297 = vmatpush1.bf16.msra.mxu1 %v264_v31 }
  0x35   :  { %266 = vmatprep.subr.bf16.mxu0 %v363_v1  ;;  %286 = vmatprep.subr.bf16.mxu1 %v363_v1 }
  0x38   :  { %268 = vmatpush1.bf16.msra.mxu0 %v267_v34  ;;  %298 = vmatpush1.bf16.msra.mxu1 %v267_v34 }
  0x39   :  { %269 = vmatprep.subr.bf16.mxu0 %v363_v1  ;;  %287 = vmatprep.subr.bf16.mxu1 %v363_v1 }
  0x3c   :  { %271 = vmatpush1.bf16.msra.mxu0 %v270_v37  ;;  %299 = vmatpush1.bf16.msra.mxu1 %v270_v37 }
  0x3d   :  { %272 = vmatprep.subr.bf16.mxu0 %v363_v1  ;;  %288 = vmatprep.subr.bf16.mxu1 %v363_v1 }
  0x40   :  { %274 = vmatpush1.bf16.msra.mxu0 %v273_v40  ;;  %300 = vmatpush1.bf16.msra.mxu1 %v273_v40 }
  0x41   :  { %275 = vmatprep.subr.bf16.mxu0 %v363_v1  ;;  %289 = vmatprep.subr.bf16.mxu1 %v363_v1 }
  0x44   :  { %277 = vmatpush1.bf16.msra.mxu0 %v276_v43  ;;  %301 = vmatpush1.bf16.msra.mxu1 %v276_v43 }
  0x95   :  { %v54_v47 = vpop.permute.xlu1 %53  ;;  %v33_v48 = vpop.permute.xlu0 %32 }
  0x96   :  { %vm58_vm0 = vcmp.eq.s32.totalorder %v27_v45, %v54_v47  ;;  %vm59_vm1 = vcmp.eq.s32.totalorder %v28_v46, %v54_v47  ;;  %vm37_vm2 = vcmp.eq.s32.totalorder %v27_v45, %v33_v48  ;;  %vm38_vm3 = vcmp.eq.s32.totalorder %v28_v46, %v33_v48 }
  0x97   :  { %v230_v50 = vsel %vm58_vm0, 1.0, %v364_v49  ;;  %v231_v51 = vsel %vm59_vm1, 1.0, %v364_v49  ;;  %v224_v52 = vsel %vm37_vm2, 1.0, %v364_v49  ;;  %v225_v53 = vsel %vm38_vm3, 1.0, %v364_v49 }
  0x98   :  { %v70_v60 = vadd.f32 %v230_v50, %v224_v52  ;;  %v71_v0 = vadd.f32 %v231_v51, %v225_v53 }
  0x99   :  { %v57_v54 = vpop.permute.xlu1 %56  ;;  %v36_v55 = vpop.permute.xlu0 %35 }
  0x9a   :  { %vm60_vm4 = vcmp.eq.s32.totalorder %v27_v45, %v57_v54  ;;  %vm61_vm5 = vcmp.eq.s32.totalorder %v28_v46, %v57_v54  ;;  %vm39_vm6 = vcmp.eq.s32.totalorder %v27_v45, %v36_v55  ;;  %vm40_vm7 = vcmp.eq.s32.totalorder %v28_v46, %v36_v55 }
  0x9b   :  { %v232_v56 = vsel %vm60_vm4, 1.0, %v364_v49  ;;  %v233_v57 = vsel %vm61_vm5, 1.0, %v364_v49  ;;  %v226_v58 = vsel %vm39_vm6, 1.0, %v364_v49  ;;  %v227_v59 = vsel %vm40_vm7, 1.0, %v364_v49 }
  0x9c   :  { %v72_v61 = vadd.f32 %v232_v56, %v226_v58  ;;  %v73_v1 = vadd.f32 %v233_v57, %v227_v59 }
  0x9d   :  { %v82_v62 = vpop.permute.xlu1 %81  ;;  %v79_v63 = vpop.permute.xlu0 %78 }
  0x9e   :  { %vm85_vm9 = vcmp.eq.s32.totalorder %v27_v45, %v82_v62  ;;  %vm86_vm10 = vcmp.eq.s32.totalorder %v28_v46, %v82_v62  ;;  %vm83_vm11 = vcmp.eq.s32.totalorder %v27_v45, %v79_v63  ;;  %vm84_vm12 = vcmp.eq.s32.totalorder %v28_v46, %v79_v63 }
  0x9f   :  { %v238_v2 = vsel %vm85_vm9, 1.0, %v364_v49  ;;  %v239_v3 = vsel %vm86_vm10, 1.0, %v364_v49  ;;  %v236_v4 = vsel %vm83_vm11, 1.0, %v364_v49  ;;  %v237_v5 = vsel %vm84_vm12, 1.0, %v364_v49 }
  0xa0   :  { %v97_v6 = vadd.f32 %v238_v2, %v72_v61  ;;  %v95_v7 = vadd.f32 %v236_v4, %v70_v60  ;;  %v96_v8 = vadd.f32 %v237_v5, %v71_v0  ;;  %v98_v9 = vadd.f32 %v239_v3, %v73_v1 }
  0xa2   :  { %240 = vmatprep.mubr.msk.f32.mxu0 %vm123_vm8, %v96_v8  ;;  %241 = vmatprep.mubr.msk.f32.mxu1 %vm123_vm8, %v98_v9 }
  0xa3   :  { %195 = vmatmul.mubr.f32.vlgmr.msra.gmra.mrb[0].mxu0 %v95_v7  ;;  %200 = vmatmul.mubr.f32.vlgmr.msra.gmra.mrb[0].mxu1 %v97_v6 }
 0x176   :  { %v196_v10 = vpop.f32.mrb[0].mxu0  ;;  %v201_v11 = vpop.f32.mrb[0].mxu1 }
 0x177   :  { %205 = vst [vmem:[#allocation5] sm:$0xff] %v196_v10  ;;  %206 = vst [vmem:[#allocation5 + $0x8] sm:$0xff] %v201_v11  ;;  %v198_v12 = vpop.f32.mrb[1].mxu0  ;;  %v203_v13 = vpop.f32.mrb[1].mxu1 }
 0x178   :  { %344 = shalt.err (!%p341_p12)
}
 0x179   :  { %s345_s10 = scalar_lea.hbm %s457_s2, 256 }
 0x17a   :  { %p346_p13 = scmp.ne.s32.totalorder %s457_s2, %s345_s10  ;;  %p349_p0 = scmp.lt.u32.totalorder %s345_s10, %s457_s2 }
 0x17c   :  { %p351_p1 = pnand %p349_p0, %p346_p13 }
 0x17e   :  { %354 = shalt.err (!%p351_p1)
}
 0x17f   :  { %218 = dma.vmem_to_hbm [thread:$0]  %s213_s6, 256, %s457_s2, [#allocation4], %s360_s19, %s360_s19, %s361_s20  }
 0x180   :  { %357 = dma.done.wait [#allocation4], 256  }
 0x181   :  { %358 = vsyncadd [#allocation4], 4294967040 }
 0x182   :  { %222 = vsyncpa [#allocation3], 1 }
 0x183   :  { %223 = vsyncpa [#allocation4], 1 }

</bundles_post_ra>
